<compile_context>
chip_gen: v5e
topology: v5e:2x2
jax: 0.10.0
libtpu: 0.0.40
codegen_flags: <defaults>
</compile_context>

<pallas_src>
import functools

import jax
import jax.numpy as jnp
from jax.experimental import pallas as pl
from jax.experimental.pallas import tpu as pltpu

HIDDEN = 256
LANE = 128
SUBLANE = 8
SMALL_BATCH = 256   # below this, one tile; per-call overhead dominates anyway


def _round_up(x, m):
    return (x + m - 1) // m * m


def _cdiv(a, b):
    return -(-a // b)


def _critic_kernel(x_ref, w1_ref, b1_ref, w2_ref, b2_ref, w3_ref, b3_ref,
                   o_ref):
    # x_ref: (bm, state_dim) tile of the batch, f32.
    x = x_ref[...]
    mm_dtype = w1_ref.dtype  # bf16 (default) or f32 matmul operands

    # Layer 1: Linear(state_dim, 256) + ReLU   (MXU matmul, f32 accumulation)
    h = jnp.dot(x.astype(mm_dtype), w1_ref[...],
                preferred_element_type=jnp.float32)
    h = jnp.maximum(h + b1_ref[...], 0.0)

    # Layer 2: Linear(256, 256) + ReLU
    h = jnp.dot(h.astype(mm_dtype), w2_ref[...],
                preferred_element_type=jnp.float32)
    h = jnp.maximum(h + b2_ref[...], 0.0)

    # Layer 3: Linear(256, action_dim_padded)  (no activation, lane-dense out)
    out = jnp.dot(h.astype(mm_dtype), w3_ref[...],
                  preferred_element_type=jnp.float32)
    o_ref[...] = (out + b3_ref[...]).astype(o_ref.dtype)


def _choose_tiling(B, block_m):
    """Pick (bm, grid_m) so padding is spread and v7x gets >=2 grid steps."""
    if B <= SMALL_BATCH:
        return max(_round_up(B, SUBLANE), SUBLANE), 1
    # >=2 steps so dimension_semantics=("parallel",) shards across both
    # TensorCores on v7x; spread padding evenly instead of one empty last tile.
    grid_m = max(_cdiv(B, block_m), 2)
    rows = _cdiv(B, grid_m)
    align = 128 if rows >= 1024 else SUBLANE   # 128-align large tiles (MXU)
    bm = _round_up(rows, align)
    return bm, grid_m


@functools.partial(jax.jit,
                   static_argnames=("block_m", "use_bf16", "out_dtype"))
def discrete_critic_forward(state, params, *, block_m=2048, use_bf16=True,
                            out_dtype=jnp.float32):
    """Fused DiscreteCritic MLP via pallas_call.

    state:  (B, state_dim) float32 (any B; padded internally).
    params: dict with w1 (S,256), b1 (1,256), w2 (256,256), b2 (1,256),
            w3 (256,A), b3 (1,A).
    block_m:   target batch tile (default 2048; keep <=4096 on v5e's 16 MiB
               default scoped VMEM, or raise vmem_limit_bytes if larger).
    use_bf16:  bf16 MXU operands with f32 accumulation (False = exact f32).
    out_dtype: kernel output dtype; bf16 halves the lane-padded output HBM
               writeback (worth ~1.3-1.6x on v6e where the kernel is HBM-bound).
    """
    B, S = state.shape
    H = params["w1"].shape[1]
    A = params["w3"].shape[1]

    # --- batch tiling
    bm, grid_m = _choose_tiling(B, block_m)
    B_pad = grid_m * bm

    # --- lane-dense output: pad action_dim up to a full 128-lane vreg
    A_pad = max(_round_up(A, LANE), LANE)

    x = state.astype(jnp.float32)
    if B_pad != B:
        x = jnp.pad(x, ((0, B_pad - B), (0, 0)))

    mm_dtype = jnp.bfloat16 if use_bf16 else jnp.float32
    w1 = params["w1"].astype(mm_dtype)
    w2 = params["w2"].astype(mm_dtype)
    w3 = params["w3"]
    b3 = params["b3"]
    if A_pad != A:
        w3 = jnp.pad(w3, ((0, 0), (0, A_pad - A)))
        b3 = jnp.pad(b3, ((0, 0), (0, A_pad - A)))
    w3 = w3.astype(mm_dtype)
    b1 = params["b1"].astype(jnp.float32)
    b2 = params["b2"].astype(jnp.float32)
    b3 = b3.astype(jnp.float32)

    # --- advisory cost estimate for the XLA scheduler
    mm_bytes = jnp.dtype(mm_dtype).itemsize
    out_bytes = jnp.dtype(out_dtype).itemsize
    flops = 2 * B_pad * (S * H + H * H + H * A_pad)
    bytes_accessed = (B_pad * S * 4 + B_pad * A_pad * out_bytes
                      + (S * H + H * H + H * A_pad) * mm_bytes
                      + (2 * H + A_pad) * 4)
    cost = pl.CostEstimate(flops=flops, transcendentals=0,
                           bytes_accessed=bytes_accessed)

    batch_map = lambda i: (i, 0)
    full_map = lambda i: (0, 0)

    out = pl.pallas_call(
        _critic_kernel,
        out_shape=jax.ShapeDtypeStruct((B_pad, A_pad), out_dtype),
        grid=(grid_m,),
        in_specs=[
            pl.BlockSpec((bm, S), batch_map),      # state tile
            pl.BlockSpec((S, H), full_map),        # w1
            pl.BlockSpec((1, H), full_map),        # b1
            pl.BlockSpec((H, H), full_map),        # w2
            pl.BlockSpec((1, H), full_map),        # b2
            pl.BlockSpec((H, A_pad), full_map),    # w3 (lane padded)
            pl.BlockSpec((1, A_pad), full_map),    # b3 (lane padded)
        ],
        out_specs=pl.BlockSpec((bm, A_pad), batch_map),
        compiler_params=pltpu.CompilerParams(
            dimension_semantics=("parallel",)),
        cost_estimate=cost,
    )(x, w1, b1, w2, b2, w3, b3)

    # Padded rows/lanes carry garbage (bias-only / zero-weight) values and are
    # sliced off here; never consume the padded block directly without masking.
    return out[:B, :A]


def init_params(key, state_dim, action_dim):
    """Deterministic init mimicking nn.Linear default (uniform +-1/sqrt(fan_in))."""
    ks = jax.random.split(key, 6)

    def linear(kw, kb, fan_in, fan_out):
        bound = 1.0 / jnp.sqrt(fan_in)
        w = jax.random.uniform(kw, (fan_in, fan_out), jnp.float32,
                               minval=-bound, maxval=bound)
        b = jax.random.uniform(kb, (1, fan_out), jnp.float32,
                               minval=-bound, maxval=bound)
        return w, b

    w1, b1 = linear(ks[0], ks[1], state_dim, HIDDEN)
    w2, b2 = linear(ks[2], ks[3], HIDDEN, HIDDEN)
    w3, b3 = linear(ks[4], ks[5], HIDDEN, action_dim)
    return {"w1": w1, "b1": b1, "w2": w2, "b2": b2, "w3": w3, "b3": b3}


def reference_forward(state, p):
    h1 = jnp.maximum(state @ p["w1"] + p["b1"], 0.0)
    h2 = jnp.maximum(h1 @ p["w2"] + p["b2"], 0.0)
    return h2 @ p["w3"] + p["b3"]


if __name__ == "__main__":
    state_dim = 32
    action_dim = 8
    batch = 16

    key = jax.random.PRNGKey(0)
    k_x, k_p, k_big = jax.random.split(key, 3)

    state = jax.random.normal(k_x, (batch, state_dim), dtype=jnp.float32)
    params = init_params(k_p, state_dim, action_dim)
    ref = reference_forward(state, params)

    # Default (bf16 matmul operands, f32 accumulation, f32 output) path.
    out = jax.block_until_ready(discrete_critic_forward(state, params))
    assert out.shape == (batch, action_dim)
    assert jnp.allclose(out, ref, atol=5e-2, rtol=5e-2), "bf16 path mismatch"

    # Exact f32 path.
    out_f32 = jax.block_until_ready(
        discrete_critic_forward(state, params, use_bf16=False))
    assert jnp.allclose(out_f32, ref, atol=1e-4, rtol=1e-4), "f32 path mismatch"

    # Ragged small batch (exercises pad + slice path).
    out_ragged = jax.block_until_ready(
        discrete_critic_forward(state[:10], params, use_bf16=False))
    assert out_ragged.shape == (10, action_dim)
    assert jnp.allclose(out_ragged, ref[:10], atol=1e-4, rtol=1e-4), \
        "ragged batch mismatch"

    # Larger batch: exercises the multi-tile path (grid_m >= 2, spread padding).
    big_B = 600
    state_big = jax.random.normal(k_big, (big_B, state_dim), dtype=jnp.float32)
    ref_big = reference_forward(state_big, params)
    out_big = jax.block_until_ready(
        discrete_critic_forward(state_big, params, use_bf16=False,
                                block_m=2048))
    assert out_big.shape == (big_B, action_dim)
    assert jnp.allclose(out_big, ref_big, atol=1e-4, rtol=1e-4), \
        "multi-tile path mismatch"

    # bf16-output path (reduced HBM writeback; v6e lever).
    out_bf16 = jax.block_until_ready(
        discrete_critic_forward(state_big, params, out_dtype=jnp.bfloat16))
    assert out_bf16.dtype == jnp.bfloat16
    assert jnp.allclose(out_bf16.astype(jnp.float32), ref_big,
                        atol=1e-1, rtol=1e-1), "bf16-output path mismatch"

    print("KERNEL_OK")
</pallas_src>

<mosaic_0001>
module attributes {stable_mosaic.version = 11 : i64} {
  func.func @_critic_kernel(%arg0: i32, %arg1: memref<16x32xf32, #tpu.memory_space<vmem>>, %arg2: memref<32x256xbf16, #tpu.memory_space<vmem>>, %arg3: memref<1x256xf32, #tpu.memory_space<vmem>>, %arg4: memref<256x256xbf16, #tpu.memory_space<vmem>>, %arg5: memref<1x256xf32, #tpu.memory_space<vmem>>, %arg6: memref<256x128xbf16, #tpu.memory_space<vmem>>, %arg7: memref<1x128xf32, #tpu.memory_space<vmem>>, %arg8: memref<16x128xf32, #tpu.memory_space<vmem>>) attributes {dimension_semantics = [#tpu.dimension_semantics<parallel>], iteration_bounds = array<i64: 1>, scalar_prefetch = 0 : i64, scratch_operands = 0 : i64, tpu.core_type = #tpu.core_type<tc>, window_params = [{transform_indices = @transform_0, window_bounds = array<i64: 16, 32>}, {pipeline_mode = #tpu.pipeline_mode<synchronous>, transform_indices = @transform_1, window_bounds = array<i64: 32, 256>}, {pipeline_mode = #tpu.pipeline_mode<synchronous>, transform_indices = @transform_2, window_bounds = array<i64: 1, 256>}, {pipeline_mode = #tpu.pipeline_mode<synchronous>, transform_indices = @transform_3, window_bounds = array<i64: 256, 256>}, {pipeline_mode = #tpu.pipeline_mode<synchronous>, transform_indices = @transform_4, window_bounds = array<i64: 1, 256>}, {pipeline_mode = #tpu.pipeline_mode<synchronous>, transform_indices = @transform_5, window_bounds = array<i64: 256, 128>}, {pipeline_mode = #tpu.pipeline_mode<synchronous>, transform_indices = @transform_6, window_bounds = array<i64: 1, 128>}, {transform_indices = @transform_7, window_bounds = array<i64: 16, 128>}]} {
    %c0 = arith.constant 0 : index
    %c0_0 = arith.constant 0 : index
    %0 = vector.load %arg1[%c0, %c0_0] : memref<16x32xf32, #tpu.memory_space<vmem>>, vector<16x32xf32>
    %1 = arith.truncf %0 : vector<16x32xf32> to vector<16x32xbf16>
    %c0_1 = arith.constant 0 : index
    %c0_2 = arith.constant 0 : index
    %2 = vector.load %arg2[%c0_1, %c0_2] : memref<32x256xbf16, #tpu.memory_space<vmem>>, vector<32x256xbf16>
    %cst = arith.constant dense<0.000000e+00> : vector<16x256xf32>
    %3 = tpu.matmul %1, %2, %cst {dimension_numbers = #tpu.dot_dimension_numbers<[1], [0], [0], [1], [0, 0, 1, 1], [], []>} : vector<16x32xbf16>, vector<32x256xbf16>, vector<16x256xf32> -> vector<16x256xf32>
    %c0_3 = arith.constant 0 : index
    %c0_4 = arith.constant 0 : index
    %4 = vector.load %arg3[%c0_3, %c0_4] : memref<1x256xf32, #tpu.memory_space<vmem>>, vector<1x256xf32>
    %5 = vector.broadcast %4 : vector<1x256xf32> to vector<16x256xf32>
    %6 = arith.addf %3, %5 : vector<16x256xf32>
    %cst_5 = arith.constant 0.000000e+00 : f32
    %7 = vector.broadcast %cst_5 : f32 to vector<16x256xf32>
    %8 = arith.maximumf %6, %7 : vector<16x256xf32>
    %9 = arith.truncf %8 : vector<16x256xf32> to vector<16x256xbf16>
    %c0_6 = arith.constant 0 : index
    %c0_7 = arith.constant 0 : index
    %10 = vector.load %arg4[%c0_6, %c0_7] : memref<256x256xbf16, #tpu.memory_space<vmem>>, vector<256x256xbf16>
    %cst_8 = arith.constant dense<0.000000e+00> : vector<16x256xf32>
    %11 = tpu.matmul %9, %10, %cst_8 {dimension_numbers = #tpu.dot_dimension_numbers<[1], [0], [0], [1], [0, 0, 1, 1], [], []>} : vector<16x256xbf16>, vector<256x256xbf16>, vector<16x256xf32> -> vector<16x256xf32>
    %c0_9 = arith.constant 0 : index
    %c0_10 = arith.constant 0 : index
    %12 = vector.load %arg5[%c0_9, %c0_10] : memref<1x256xf32, #tpu.memory_space<vmem>>, vector<1x256xf32>
    %13 = vector.broadcast %12 : vector<1x256xf32> to vector<16x256xf32>
    %14 = arith.addf %11, %13 : vector<16x256xf32>
    %cst_11 = arith.constant 0.000000e+00 : f32
    %15 = vector.broadcast %cst_11 : f32 to vector<16x256xf32>
    %16 = arith.maximumf %14, %15 : vector<16x256xf32>
    %17 = arith.truncf %16 : vector<16x256xf32> to vector<16x256xbf16>
    %c0_12 = arith.constant 0 : index
    %c0_13 = arith.constant 0 : index
    %18 = vector.load %arg6[%c0_12, %c0_13] : memref<256x128xbf16, #tpu.memory_space<vmem>>, vector<256x128xbf16>
    %cst_14 = arith.constant dense<0.000000e+00> : vector<16x128xf32>
    %19 = tpu.matmul %17, %18, %cst_14 {dimension_numbers = #tpu.dot_dimension_numbers<[1], [0], [0], [1], [0, 0, 1, 1], [], []>} : vector<16x256xbf16>, vector<256x128xbf16>, vector<16x128xf32> -> vector<16x128xf32>
    %c0_15 = arith.constant 0 : index
    %c0_16 = arith.constant 0 : index
    %20 = vector.load %arg7[%c0_15, %c0_16] : memref<1x128xf32, #tpu.memory_space<vmem>>, vector<1x128xf32>
    %21 = vector.broadcast %20 : vector<1x128xf32> to vector<16x128xf32>
    %22 = arith.addf %19, %21 : vector<16x128xf32>
    %c0_17 = arith.constant 0 : index
    %c0_18 = arith.constant 0 : index
    %23 = vector.load %arg8[%c0_17, %c0_18] : memref<16x128xf32, #tpu.memory_space<vmem>>, vector<16x128xf32>
    tpu.vector_store %arg8[%c0_17, %c0_18], %22 {strides = array<i32>} : memref<16x128xf32, #tpu.memory_space<vmem>>, vector<16x128xf32>,
    return
  }
  func.func @transform_0(%arg0: i32) -> (i32, i32) {
    %c0_i32 = arith.constant 0 : i32
    %c0_i32_0 = arith.constant 0 : i32
    return %arg0, %c0_i32 : i32, i32
  }
  func.func @transform_1(%arg0: i32) -> (i32, i32) {
    %c0_i32 = arith.constant 0 : i32
    %c0_i32_0 = arith.constant 0 : i32
    %c0_i32_1 = arith.constant 0 : i32
    return %c0_i32, %c0_i32_0 : i32, i32
  }
  func.func @transform_2(%arg0: i32) -> (i32, i32) {
    %c0_i32 = arith.constant 0 : i32
    %c0_i32_0 = arith.constant 0 : i32
    %c0_i32_1 = arith.constant 0 : i32
    return %c0_i32, %c0_i32_0 : i32, i32
  }
  func.func @transform_3(%arg0: i32) -> (i32, i32) {
    %c0_i32 = arith.constant 0 : i32
    %c0_i32_0 = arith.constant 0 : i32
    %c0_i32_1 = arith.constant 0 : i32
    return %c0_i32, %c0_i32_0 : i32, i32
  }
  func.func @transform_4(%arg0: i32) -> (i32, i32) {
    %c0_i32 = arith.constant 0 : i32
    %c0_i32_0 = arith.constant 0 : i32
    %c0_i32_1 = arith.constant 0 : i32
    return %c0_i32, %c0_i32_0 : i32, i32
  }
  func.func @transform_5(%arg0: i32) -> (i32, i32) {
    %c0_i32 = arith.constant 0 : i32
    %c0_i32_0 = arith.constant 0 : i32
    %c0_i32_1 = arith.constant 0 : i32
    return %c0_i32, %c0_i32_0 : i32, i32
  }
  func.func @transform_6(%arg0: i32) -> (i32, i32) {
    %c0_i32 = arith.constant 0 : i32
    %c0_i32_0 = arith.constant 0 : i32
    %c0_i32_1 = arith.constant 0 : i32
    return %c0_i32, %c0_i32_0 : i32, i32
  }
  func.func @transform_7(%arg0: i32) -> (i32, i32) {
    %c0_i32 = arith.constant 0 : i32
    %c0_i32_0 = arith.constant 0 : i32
    return %arg0, %c0_i32 : i32, i32
  }
}

</mosaic_0001>

<bundles_post_ra>
// kernel: discrete_critic_forward.1
= control target key start
LH: loop header
LB: loop body
LE: loop exit
PB: predicated region body
PF: predicated region fallthrough
CT: control target
= control target key end

     0   :  { %vm60_vm0 = vcmask 261120   ;;  %s1114_s1 = inlined_call_operand.vmem [shape: bf16[32,256], index: 1, kind: input, shape index: {}]   ;;  %s1115_s0 = inlined_call_operand.vmem [shape: f32[16,32], index: 0, kind: input, shape index: {}]   ;;  %s1116_s3 = inlined_call_operand.vmem [shape: bf16[256,256], index: 3, kind: input, shape index: {}]   ;;  %s1117_s5 = inlined_call_operand.vmem [shape: bf16[256,128], index: 5, kind: input, shape index: {}]   ;;  %s1118_s2 = inlined_call_operand.vmem [shape: f32[1,256], index: 2, kind: input, shape index: {}]   ;;  %s1119_s4 = inlined_call_operand.vmem [shape: f32[1,256], index: 4, kind: input, shape index: {}]   ;;  %s1120_s6 = inlined_call_operand.vmem [shape: f32[1,128], index: 6, kind: input, shape index: {}]   ;;  %s1121_s7 = inlined_call_operand.vmem [shape: f32[16,128], index: 7, kind: output, shape index: {}]  }
   0x1   :  { %v534_v0 = vld [vmem:[%s1114_s1 + $0x10] sm:$0xf]  ;;  %v737_v1 = vld [vmem:[%s1114_s1 + $0x14] sm:$0xf0]  ;;  %v736_v2 = vld [vmem:[%s1114_s1 + $0x14] sm:$0xf] }
   0x2   :  { %v535_v3 = vor.u32 %v737_v1, %v534_v0  ;;  %v536_v4 = vld [vmem:[%s1114_s1 + $0x18] sm:$0xf0]  ;;  %v526_v5 = vld [vmem:[%s1114_s1] sm:$0xf]  ;;  %v735_v6 = vld [vmem:[%s1114_s1 + $0x4] sm:$0xf0] }
   0x3   :  { %v539_v7 = vor.u32 %v736_v2, %v536_v4  ;;  %v734_v8 = vld [vmem:[%s1114_s1 + $0x4] sm:$0xf]  ;;  %v528_v9 = vld [vmem:[%s1114_s1 + $0x8] sm:$0xf0]  ;;  %v527_v11 = vor.u32 %v735_v6, %v526_v5  ;;  %v600_v13 = vld [vmem:[%s1116_s3 + $0x70] sm:$0xf] }
   0x4   :  { %v27_v10 = vld [vmem:[%s1115_s0] sm:$0xff]  ;;  %70 = vmatpush.bf16.msra.mxu0 %v535_v3  ;;  %v28_v12 = vld [vmem:[%s1115_s0 + $0x8] sm:$0xff]  ;;  %v753_v14 = vld [vmem:[%s1116_s3 + $0x74] sm:$0xf0]  ;;  %v531_v15 = vor.u32 %v734_v8, %v528_v9 }
   0x5   :  { %84 = vmatpush.bf16.msra.mxu1 %v539_v7  ;;  %v601_v16 = vor.u32 %v753_v14, %v600_v13  ;;  %v664_v17 = vld [vmem:[%s1116_s3 + $0xf0] sm:$0xf]  ;;  %v769_v18 = vld [vmem:[%s1116_s3 + $0xf4] sm:$0xf0]  ;;  %v752_v19 = vld [vmem:[%s1116_s3 + $0x74] sm:$0xf]  ;;  %v29_v24 = vpack.c.bf16 %v28_v12, %v27_v10 }
   0x6   :  { %v665_v20 = vor.u32 %v769_v18, %v664_v17  ;;  %v602_v21 = vld [vmem:[%s1116_s3 + $0x78] sm:$0xf0]  ;;  %v768_v22 = vld [vmem:[%s1116_s3 + $0xf4] sm:$0xf]  ;;  %v592_v27 = vld [vmem:[%s1116_s3 + $0x60] sm:$0xf] }
   0x7   :  { %v666_v23 = vld [vmem:[%s1116_s3 + $0xf8] sm:$0xf0]  ;;  %296 = vmatpush.bf16.msra.mxu2 %v601_v16  ;;  %v605_v25 = vor.u32 %v752_v19, %v602_v21  ;;  %v751_v28 = vld [vmem:[%s1116_s3 + $0x64] sm:$0xf0]  ;;  %v656_v29 = vld [vmem:[%s1116_s3 + $0xe0] sm:$0xf] }
   0x8   :  { %v669_v26 = vor.u32 %v768_v22, %v666_v23  ;;  %71 = vmatpush.bf16.msra.mxu0 %v527_v11  ;;  %310 = vmatpush.bf16.msra.mxu3 %v665_v20  ;;  %v593_v30 = vor.u32 %v751_v28, %v592_v27  ;;  %v767_v31 = vld [vmem:[%s1116_s3 + $0xe4] sm:$0xf0]  ;;  %v750_v32 = vld [vmem:[%s1116_s3 + $0x64] sm:$0xf]  ;;  %v594_v33 = vld [vmem:[%s1116_s3 + $0x68] sm:$0xf0] }
   0x9   :  { %85 = vmatpush.bf16.msra.mxu1 %v531_v15  ;;  %v657_v34 = vor.u32 %v767_v31, %v656_v29  ;;  %v597_v35 = vor.u32 %v750_v32, %v594_v33  ;;  %v766_v36 = vld [vmem:[%s1116_s3 + $0xe4] sm:$0xf]  ;;  %v658_v37 = vld [vmem:[%s1116_s3 + $0xe8] sm:$0xf0]  ;;  %v584_v38 = vld [vmem:[%s1116_s3 + $0x50] sm:$0xf] }
   0xa   :  { %v661_v39 = vor.u32 %v766_v36, %v658_v37  ;;  %v749_v40 = vld [vmem:[%s1116_s3 + $0x54] sm:$0xf0]  ;;  %v648_v41 = vld [vmem:[%s1116_s3 + $0xd0] sm:$0xf]  ;;  %v748_v44 = vld [vmem:[%s1116_s3 + $0x54] sm:$0xf] }
   0xb   :  { %v765_v42 = vld [vmem:[%s1116_s3 + $0xd4] sm:$0xf0]  ;;  %540 = vmatmul.msk.bf16.vlgmr.msra.gmra.mxu0 %vm60_vm0, %v29_v24  ;;  %297 = vmatpush.bf16.msra.mxu2 %v593_v30  ;;  %v585_v43 = vor.u32 %v749_v40, %v584_v38  ;;  %v586_v45 = vld [vmem:[%s1116_s3 + $0x58] sm:$0xf0]  ;;  %v764_v46 = vld [vmem:[%s1116_s3 + $0xd4] sm:$0xf] }
   0xc   :  { %324 = vmatpush.bf16.msrb.mxu0 %v605_v25  ;;  %541 = vmatmul.msk.bf16.vlgmr.msra.gmra.mxu1 %vm60_vm0, %v29_v24  ;;  %v649_v47 = vor.u32 %v765_v42, %v648_v41  ;;  %v650_v48 = vld [vmem:[%s1116_s3 + $0xd8] sm:$0xf0]  ;;  %v576_v49 = vld [vmem:[%s1116_s3 + $0x40] sm:$0xf]  ;;  %v747_v50 = vld [vmem:[%s1116_s3 + $0x44] sm:$0xf0]  ;;  %v589_v51 = vor.u32 %v748_v44, %v586_v45 }
   0xd   :  { %338 = vmatpush.bf16.msrb.mxu1 %v669_v26  ;;  %311 = vmatpush.bf16.msra.mxu3 %v657_v34  ;;  %v640_v52 = vld [vmem:[%s1116_s3 + $0xc0] sm:$0xf]  ;;  %v763_v53 = vld [vmem:[%s1116_s3 + $0xc4] sm:$0xf0]  ;;  %v653_v54 = vor.u32 %v764_v46, %v650_v48  ;;  %v746_v55 = vld [vmem:[%s1116_s3 + $0x44] sm:$0xf]  ;;  %v577_v57 = vor.u32 %v747_v50, %v576_v49 }
   0xe   :  { %v578_v56 = vld [vmem:[%s1116_s3 + $0x48] sm:$0xf0]  ;;  %v762_v58 = vld [vmem:[%s1116_s3 + $0xc4] sm:$0xf]  ;;  %v641_v60 = vor.u32 %v763_v53, %v640_v52  ;;  %v568_v63 = vld [vmem:[%s1116_s3 + $0x30] sm:$0xf] }
   0xf   :  { %298 = vmatpush.bf16.msra.mxu2 %v585_v43  ;;  %v642_v59 = vld [vmem:[%s1116_s3 + $0xc8] sm:$0xf0]  ;;  %v581_v61 = vor.u32 %v746_v55, %v578_v56  ;;  %v745_v0 = vld [vmem:[%s1116_s3 + $0x34] sm:$0xf0]  ;;  %v632_v1 = vld [vmem:[%s1116_s3 + $0xb0] sm:$0xf] }
  0x10   :  { %325 = vmatpush.bf16.msrb.mxu0 %v597_v35  ;;  %v645_v62 = vor.u32 %v762_v58, %v642_v59  ;;  %v569_v2 = vor.u32 %v745_v0, %v568_v63  ;;  %v761_v3 = vld [vmem:[%s1116_s3 + $0xb4] sm:$0xf0]  ;;  %v744_v4 = vld [vmem:[%s1116_s3 + $0x34] sm:$0xf]  ;;  %v570_v5 = vld [vmem:[%s1116_s3 + $0x38] sm:$0xf0] }
  0x11   :  { %339 = vmatpush.bf16.msrb.mxu1 %v661_v39  ;;  %312 = vmatpush.bf16.msra.mxu3 %v649_v47  ;;  %v633_v6 = vor.u32 %v761_v3, %v632_v1  ;;  %v573_v7 = vor.u32 %v744_v4, %v570_v5  ;;  %v760_v8 = vld [vmem:[%s1116_s3 + $0xb4] sm:$0xf]  ;;  %v634_v9 = vld [vmem:[%s1116_s3 + $0xb8] sm:$0xf0]  ;;  %v560_v11 = vld [vmem:[%s1116_s3 + $0x20] sm:$0xf] }
  0x12   :  { %v637_v10 = vor.u32 %v760_v8, %v634_v9  ;;  %v743_v12 = vld [vmem:[%s1116_s3 + $0x24] sm:$0xf0]  ;;  %v624_v14 = vld [vmem:[%s1116_s3 + $0xa0] sm:$0xf]  ;;  %v742_v16 = vld [vmem:[%s1116_s3 + $0x24] sm:$0xf] }
  0x13   :  { %299 = vmatpush.bf16.msra.mxu2 %v577_v57  ;;  %v561_v13 = vor.u32 %v743_v12, %v560_v11  ;;  %v759_v15 = vld [vmem:[%s1116_s3 + $0xa4] sm:$0xf0]  ;;  %v562_v18 = vld [vmem:[%s1116_s3 + $0x28] sm:$0xf0]  ;;  %v758_v19 = vld [vmem:[%s1116_s3 + $0xa4] sm:$0xf] }
  0x14   :  { %326 = vmatpush.bf16.msrb.mxu0 %v589_v51  ;;  %v625_v17 = vor.u32 %v759_v15, %v624_v14  ;;  %v626_v20 = vld [vmem:[%s1116_s3 + $0xa8] sm:$0xf0]  ;;  %v565_v21 = vor.u32 %v742_v16, %v562_v18  ;;  %v552_v23 = vld [vmem:[%s1116_s3 + $0x10] sm:$0xf]  ;;  %v741_v24 = vld [vmem:[%s1116_s3 + $0x14] sm:$0xf0] }
  0x15   :  { %340 = vmatpush.bf16.msrb.mxu1 %v653_v54  ;;  %313 = vmatpush.bf16.msra.mxu3 %v641_v60  ;;  %v629_v22 = vor.u32 %v758_v19, %v626_v20  ;;  %v616_v25 = vld [vmem:[%s1116_s3 + $0x90] sm:$0xf]  ;;  %v553_v26 = vor.u32 %v741_v24, %v552_v23  ;;  %v757_v27 = vld [vmem:[%s1116_s3 + $0x94] sm:$0xf0]  ;;  %v740_v28 = vld [vmem:[%s1116_s3 + $0x14] sm:$0xf] }
  0x16   :  { %v554_v29 = vld [vmem:[%s1116_s3 + $0x18] sm:$0xf0]  ;;  %v617_v30 = vor.u32 %v757_v27, %v616_v25  ;;  %v756_v32 = vld [vmem:[%s1116_s3 + $0x94] sm:$0xf]  ;;  %v544_v35 = vld [vmem:[%s1116_s3] sm:$0xf] }
  0x17   :  { %300 = vmatpush.bf16.msra.mxu2 %v569_v2  ;;  %v557_v31 = vor.u32 %v740_v28, %v554_v29  ;;  %v618_v33 = vld [vmem:[%s1116_s3 + $0x98] sm:$0xf0]  ;;  %v739_v36 = vld [vmem:[%s1116_s3 + $0x4] sm:$0xf0]  ;;  %v608_v37 = vld [vmem:[%s1116_s3 + $0x80] sm:$0xf] }
  0x18   :  { %327 = vmatpush.bf16.msrb.mxu0 %v581_v61  ;;  %v621_v34 = vor.u32 %v756_v32, %v618_v33  ;;  %v545_v38 = vor.u32 %v739_v36, %v544_v35  ;;  %v755_v39 = vld [vmem:[%s1116_s3 + $0x84] sm:$0xf0]  ;;  %v738_v40 = vld [vmem:[%s1116_s3 + $0x4] sm:$0xf]  ;;  %v546_v41 = vld [vmem:[%s1116_s3 + $0x8] sm:$0xf0] }
  0x19   :  { %341 = vmatpush.bf16.msrb.mxu1 %v645_v62  ;;  %314 = vmatpush.bf16.msra.mxu3 %v633_v6  ;;  %v609_v42 = vor.u32 %v755_v39, %v608_v37  ;;  %v549_v43 = vor.u32 %v738_v40, %v546_v41  ;;  %v754_v44 = vld [vmem:[%s1116_s3 + $0x84] sm:$0xf]  ;;  %v610_v45 = vld [vmem:[%s1116_s3 + $0x88] sm:$0xf0]  ;;  %v785_v47 = vld [vmem:[%s1117_s5 + $0x78] sm:$0xff] }
  0x1a   :  { %v613_v46 = vor.u32 %v754_v44, %v610_v45  ;;  %v777_v48 = vld [vmem:[%s1117_s5 + $0x38] sm:$0xff]  ;;  %v784_v49 = vld [vmem:[%s1117_s5 + $0x70] sm:$0xff]  ;;  %v783_v51 = vld [vmem:[%s1117_s5 + $0x68] sm:$0xff] }
  0x1b   :  { %301 = vmatpush.bf16.msra.mxu2 %v561_v13  ;;  %v776_v50 = vld [vmem:[%s1117_s5 + $0x30] sm:$0xff]  ;;  %v782_v52 = vld [vmem:[%s1117_s5 + $0x60] sm:$0xff]  ;;  %v775_v6 = vld [vmem:[%s1117_s5 + $0x28] sm:$0xff] }
  0x1c   :  { %328 = vmatpush.bf16.msrb.mxu0 %v573_v7  ;;  %v34_v53 = vld [vmem:[%s1118_s2] sm:$0x3]  ;;  %v781_v7 = vld [vmem:[%s1117_s5 + $0x58] sm:$0xff]  ;;  %v780_v9 = vld [vmem:[%s1117_s5 + $0x50] sm:$0xff] }
  0x1d   :  { %342 = vmatpush.bf16.msrb.mxu1 %v637_v10  ;;  %315 = vmatpush.bf16.msra.mxu3 %v625_v17  ;;  %v36_v56 = vperm.slane %v34_v53, 0  ;;  %v37_v57 = vperm.slane %v34_v53, 1  ;;  %v774_v8 = vld [vmem:[%s1117_s5 + $0x20] sm:$0xff]  ;;  %v773_v10 = vld [vmem:[%s1117_s5 + $0x18] sm:$0xff]  ;;  %v779_v11 = vld [vmem:[%s1117_s5 + $0x48] sm:$0xff] }
  0x1e   :  { %v772_v12 = vld [vmem:[%s1117_s5 + $0x10] sm:$0xff]  ;;  %v778_v13 = vld [vmem:[%s1117_s5 + $0x40] sm:$0xff]  ;;  %v771_v14 = vld [vmem:[%s1117_s5 + $0x8] sm:$0xff] }
  0x1f   :  { %302 = vmatpush.bf16.msra.mxu2 %v553_v26  ;;  %v770_v15 = vld [vmem:[%s1117_s5] sm:$0xff] }
  0x20   :  { %329 = vmatpush.bf16.msrb.mxu0 %v565_v21  ;;  %v130_v16 = vld [vmem:[%s1119_s4] sm:$0x3] }
  0x21   :  { %343 = vmatpush.bf16.msrb.mxu1 %v629_v22  ;;  %316 = vmatpush.bf16.msra.mxu3 %v617_v30  ;;  %v133_v18 = vperm.slane %v130_v16, 1  ;;  %v132_v22 = vperm.slane %v130_v16, 0  ;;  %v786_v41 = vld [vmem:[%s1120_s6] ss:$0 sm:$0xff] }
  0x23   :  { %303 = vmatpush.bf16.msra.mxu2 %v545_v38 }
  0x24   :  { %330 = vmatpush.bf16.msrb.mxu0 %v557_v31 }
  0x25   :  { %344 = vmatpush.bf16.msrb.mxu1 %v621_v34  ;;  %317 = vmatpush.bf16.msra.mxu3 %v609_v42 }
  0x27   :  { %490 = vmatpush.bf16.msrb.mxu2 %v777_v48 }
  0x28   :  { %331 = vmatpush.bf16.msrb.mxu0 %v549_v43 }
  0x29   :  { %345 = vmatpush.bf16.msrb.mxu1 %v613_v46  ;;  %504 = vmatpush.bf16.msrb.mxu3 %v785_v47 }
  0x2b   :  { %491 = vmatpush.bf16.msrb.mxu2 %v776_v50 }
  0x2d   :  { %505 = vmatpush.bf16.msrb.mxu3 %v784_v49 }
  0x2f   :  { %492 = vmatpush.bf16.msrb.mxu2 %v775_v6 }
  0x31   :  { %506 = vmatpush.bf16.msrb.mxu3 %v783_v51 }
  0x33   :  { %493 = vmatpush.bf16.msrb.mxu2 %v774_v8 }
  0x35   :  { %507 = vmatpush.bf16.msrb.mxu3 %v782_v52 }
  0x37   :  { %494 = vmatpush.bf16.msrb.mxu2 %v773_v10 }
  0x39   :  { %508 = vmatpush.bf16.msrb.mxu3 %v781_v7 }
  0x3b   :  { %495 = vmatpush.bf16.msrb.mxu2 %v772_v12 }
  0x3d   :  { %509 = vmatpush.bf16.msrb.mxu3 %v780_v9 }
  0x3f   :  { %496 = vmatpush.bf16.msrb.mxu2 %v771_v14 }
  0x41   :  { %510 = vmatpush.bf16.msrb.mxu3 %v779_v11 }
  0x43   :  { %497 = vmatpush.bf16.msrb.mxu2 %v770_v15 }
  0x45   :  { %511 = vmatpush.bf16.msrb.mxu3 %v778_v13 }
  0x88   :  { %v73_v54 = vpop.f32.mrf.mxu0 }
  0x89   :  { %v87_v55 = vpop.f32.mrf.mxu1  ;;  %v74_v58 = vadd.f32 %v73_v54, %v36_v56 }
  0x8a   :  { %v88_v59 = vadd.f32 %v87_v55, %v37_v57 }
  0x8b   :  { %v92_v0 = vmax.f32 %v74_v58, 0.0 }
  0x8c   :  { %v93_v2 = vmax.f32 %v88_v59, 0.0 }
  0x90   :  { %v75_v60 = vpop.f32.mrf.mxu0 }
  0x91   :  { %v76_v61 = vadd.f32 %v75_v60, %v36_v56  ;;  %v89_v62 = vpop.f32.mrf.mxu1 }
  0x92   :  { %v90_v63 = vadd.f32 %v89_v62, %v37_v57 }
  0x93   :  { %v94_v1 = vmax.f32 %v76_v61, 0.0 }
  0x94   :  { %v95_v3 = vmax.f32 %v90_v63, 0.0 }
  0x95   :  { %v96_v4 = vpack.c.bf16 %v94_v1, %v92_v0 }
  0x96   :  { %v97_v5 = vpack.c.bf16 %v95_v3, %v93_v2 }
  0x97   :  { %304 = vmatmul.bf16.vlgmr.msra.gmra.mxu2 %v96_v4  ;;  %332 = vmatmul.bf16.vlgmr.msrb.gmra.mxu0 %v96_v4 }
  0x98   :  { %318 = vmatmul.bf16.vlgmr.msra.gmra.mxu3 %v97_v5  ;;  %346 = vmatmul.bf16.vlgmr.msrb.gmra.mxu1 %v97_v5 }
 0x114   :  { %v333_v17 = vpop.f32.mrf.mxu0 }
 0x115   :  { %v347_v19 = vpop.f32.mrf.mxu1  ;;  %v334_v20 = vadd.f32 %v333_v17, %v133_v18 }
 0x117   :  { %v348_v25 = vadd.f32 %v347_v19, %v334_v20 }
 0x119   :  { %v353_v30 = vmax.f32 %v348_v25, 0.0 }
 0x11a   :  { %v305_v21 = vpop.f32.mrf.mxu2 }
 0x11b   :  { %v319_v23 = vpop.f32.mrf.mxu3  ;;  %v306_v28 = vadd.f32 %v305_v21, %v132_v22 }
 0x11c   :  { %v335_v24 = vpop.f32.mrf.mxu0 }
 0x11d   :  { %v336_v26 = vadd.f32 %v335_v24, %v133_v18  ;;  %v349_v27 = vpop.f32.mrf.mxu1  ;;  %v320_v33 = vadd.f32 %v319_v23, %v306_v28 }
 0x11f   :  { %v350_v29 = vadd.f32 %v349_v27, %v336_v26  ;;  %v352_v38 = vmax.f32 %v320_v33, 0.0 }
 0x121   :  { %v355_v31 = vmax.f32 %v350_v29, 0.0 }
 0x122   :  { %v307_v32 = vpop.f32.mrf.mxu2 }
 0x123   :  { %v357_v34 = vpack.c.bf16 %v355_v31, %v353_v30  ;;  %v308_v35 = vadd.f32 %v307_v32, %v132_v22  ;;  %v321_v36 = vpop.f32.mrf.mxu3 }
 0x125   :  { %v322_v37 = vadd.f32 %v321_v36, %v308_v35  ;;  %512 = vmatmul.bf16.vlgmr.msrb.gmra.mxu3 %v357_v34 }
 0x127   :  { %v354_v39 = vmax.f32 %v322_v37, 0.0 }
 0x129   :  { %v356_v40 = vpack.c.bf16 %v354_v39, %v352_v38 }
 0x12b   :  { %498 = vmatmul.bf16.vlgmr.msrb.gmra.mxu2 %v356_v40 }
 0x1a8   :  { %v513_v42 = vpop.f32.mrf.mxu3 }
 0x1ae   :  { %v499_v43 = vpop.f32.mrf.mxu2 }
 0x1af   :  { %v500_v44 = vadd.f32 %v786_v41, %v499_v43 }
 0x1b0   :  { %v515_v48 = vpop.f32.mrf.mxu3 }
 0x1b1   :  { %v514_v45 = vadd.f32 %v513_v42, %v500_v44 }
 0x1b3   :  { %518 = vst [vmem:[%s1121_s7] sm:$0xff] %v514_v45 }
 0x1b6   :  { %v501_v46 = vpop.f32.mrf.mxu2 }
 0x1b7   :  { %v502_v47 = vadd.f32 %v786_v41, %v501_v46 }
 0x1b9   :  { %v516_v49 = vadd.f32 %v515_v48, %v502_v47 }
 0x1bb   :  { %519 = vst [vmem:[%s1121_s7 + $0x8] sm:$0xff] %v516_v49 }

</bundles_post_ra>
